<compile_context>
chip_gen: v7x
topology: tpu7x:2x2x1
jax: 0.10.0
libtpu: 0.0.40
codegen_flags: <defaults>
</compile_context>

<pallas_src>
import jax
import jax.numpy as jnp
from jax.experimental import pallas as pl
from jax.experimental.pallas import tpu as pltpu


def svm_predict_kernel(x_ref, w_ref, b_ref, score_ref, pred_ref):
    x = x_ref[...]                 # (TM, F) streamed input tile
    w = w_ref[...]                 # (1, F)  resident weight row
    # Decision function: VPU multiply + cross-lane (XLU) reduce in f32.
    # No MXU push/pop for a degenerate N=1 output.
    s = jnp.sum(x * w, axis=-1) + b_ref[0]          # (TM,)
    score_ref[...] = s[None, :]                      # lane-dense (1, TM) store
    pred_ref[...] = (s > 0.0).astype(jnp.int32)[None, :]


def _round_up(n, m):
    return ((n + m - 1) // m) * m


def _choose_tile(B, F):
    """VMEM-budget-driven batch tile size.

    One (TM, F) f32 tile occupies TM * round_up(F, 128) * 4 bytes of VMEM
    (lane dim pads to 128).  A ~4 MiB per-buffer budget keeps the
    double-buffered x stream ~8 MiB: safely inside v5e's 16 MiB default
    scoped VMEM and v7x's 32 MiB / 64 MiB physical per-TC budget.
    """
    budget = 4 << 20
    lane_bytes = _round_up(F, 128) * 4
    tm_cap = max(128, (budget // lane_bytes) // 128 * 128)
    if B <= 256:
        return B                                    # single full-array block
    # Keep >= 2 balanced grid steps so v7x's two TensorCores both get work;
    # tile stays a multiple of 128 so output lane blocks remain dense/legal.
    two_way = _round_up((B + 1) // 2, 128)
    return min(tm_cap, two_way)


@jax.jit
def svm_predict(x, coef, intercept):
    """Returns (decision_scores (B,) f32, predicted_labels (B,) int32)."""
    B, F = x.shape
    TM = _choose_tile(B, F)
    n_blk = pl.cdiv(B, TM)

    x = x.astype(jnp.float32)
    w_row = coef.reshape(1, F).astype(jnp.float32)
    b = jnp.asarray(intercept, jnp.float32).reshape(1)

    # TODO(synk): optional bf16 input path (halves HBM read traffic) is left
    #             out to keep numerics identical to the f32 reference.
    grid_spec = pltpu.PrefetchScalarGridSpec(
        num_scalar_prefetch=0,
        grid=(n_blk,),
        in_specs=[
            pl.BlockSpec((TM, F), lambda i: (i, 0)),            # x, streamed
            pl.BlockSpec((1, F), lambda i: (0, 0)),             # w, resident
            pl.BlockSpec(memory_space=pltpu.MemorySpace.SMEM),  # intercept
        ],
        out_specs=[
            pl.BlockSpec((1, TM), lambda i: (0, i)),  # scores, lane-dense
            pl.BlockSpec((1, TM), lambda i: (0, i)),  # preds, lane-dense
        ],
    )

    scores, preds = pl.pallas_call(
        svm_predict_kernel,
        out_shape=(
            jax.ShapeDtypeStruct((1, B), jnp.float32),
            jax.ShapeDtypeStruct((1, B), jnp.int32),
        ),
        grid_spec=grid_spec,
        compiler_params=pltpu.CompilerParams(
            dimension_semantics=("parallel",),
        ),
    )(x, w_row, b)

    return scores.reshape(B), preds.reshape(B)


def reference_predict(x, coef, intercept):
    scores = jnp.sum(x * coef.reshape(1, -1), axis=-1) + jnp.asarray(
        intercept, jnp.float32).reshape(())
    preds = (scores > 0.0).astype(jnp.int32)
    return scores, preds


def make_params(key, num_features):
    """Synthesize deterministic LinearSVC-style parameters (coef_, intercept_).

    Actual fitting (liblinear) is out of scope; we just build a plausible
    hyperplane so predict() has something to evaluate.
    """
    k_w, k_b = jax.random.split(key)
    coef = 0.1 * jax.random.normal(k_w, (1, num_features), jnp.float32)
    intercept = 0.05 * jax.random.normal(k_b, (1,), jnp.float32)
    return coef, intercept


if __name__ == "__main__":
    key = jax.random.PRNGKey(0)
    k_x1, k_x2, k_p = jax.random.split(key, 3)

    num_features = 16
    coef, intercept = make_params(k_p, num_features)

    # Small case (single full-array block).
    x_small = jax.random.normal(k_x1, (8, num_features), jnp.float32)
    s_small, p_small = svm_predict(x_small, coef, intercept)
    s_small = jax.block_until_ready(s_small)
    rs, rp = reference_predict(x_small, coef, intercept)
    assert s_small.shape == (8,) and p_small.shape == (8,)
    assert jnp.allclose(s_small, rs, atol=1e-5, rtol=1e-5), "score mismatch (small)"
    assert jnp.array_equal(p_small, rp), "label mismatch (small)"

    # Larger case: two grid steps with a ragged (masked) last block, no padding.
    x_large = jax.random.normal(k_x2, (300, num_features), jnp.float32)
    s_large, p_large = svm_predict(x_large, coef, intercept)
    s_large = jax.block_until_ready(s_large)
    rs, rp = reference_predict(x_large, coef, intercept)
    assert s_large.shape == (300,) and p_large.shape == (300,)
    assert jnp.allclose(s_large, rs, atol=1e-5, rtol=1e-5), "score mismatch (large)"
    assert jnp.array_equal(p_large, rp), "label mismatch (large)"

    print("KERNEL_OK")
</pallas_src>

<mosaic_0001>
module attributes {stable_mosaic.version = 11 : i64} {
  func.func @svm_predict_kernel(%arg0: i32, %arg1: memref<8x16xf32, #tpu.memory_space<vmem>>, %arg2: memref<1x16xf32, #tpu.memory_space<vmem>>, %arg3: memref<1xf32, #tpu.memory_space<smem>>, %arg4: memref<1x8xf32, #tpu.memory_space<vmem>>, %arg5: memref<1x8xi32, #tpu.memory_space<vmem>>) attributes {dimension_semantics = [#tpu.dimension_semantics<parallel>], iteration_bounds = array<i64: 1>, scalar_prefetch = 0 : i64, scratch_operands = 0 : i64, tpu.core_type = #tpu.core_type<tc>, window_params = [{transform_indices = @transform_0, window_bounds = array<i64: 8, 16>}, {pipeline_mode = #tpu.pipeline_mode<synchronous>, transform_indices = @transform_1, window_bounds = array<i64: 1, 16>}, {transform_indices = @transform_2, window_bounds = array<i64: 1>}, {transform_indices = @transform_3, window_bounds = array<i64: 1, 8>}, {transform_indices = @transform_4, window_bounds = array<i64: 1, 8>}]} {
    %c0 = arith.constant 0 : index
    %c0_0 = arith.constant 0 : index
    %0 = vector.load %arg1[%c0, %c0_0] : memref<8x16xf32, #tpu.memory_space<vmem>>, vector<8x16xf32>
    %c0_1 = arith.constant 0 : index
    %c0_2 = arith.constant 0 : index
    %1 = vector.load %arg2[%c0_1, %c0_2] : memref<1x16xf32, #tpu.memory_space<vmem>>, vector<1x16xf32>
    %2 = vector.broadcast %1 : vector<1x16xf32> to vector<8x16xf32>
    %3 = arith.mulf %0, %2 : vector<8x16xf32>
    %cst = arith.constant dense<0.000000e+00> : vector<8xf32>
    %4 = vector.multi_reduction <add>, %3, %cst [1] : vector<8x16xf32> to vector<8xf32>
    %c0_3 = arith.constant 0 : index
    %5 = memref.load %arg3[%c0_3] : memref<1xf32, #tpu.memory_space<smem>>
    %6 = vector.broadcast %5 : f32 to vector<8xf32>
    %7 = arith.addf %4, %6 : vector<8xf32>
    %8 = vector.shape_cast %7 : vector<8xf32> to vector<1x8xf32>
    %c0_4 = arith.constant 0 : index
    %c0_5 = arith.constant 0 : index
    %9 = vector.load %arg4[%c0_4, %c0_5] : memref<1x8xf32, #tpu.memory_space<vmem>>, vector<1x8xf32>
    tpu.vector_store %arg4[%c0_4, %c0_5], %8 {strides = array<i32>} : memref<1x8xf32, #tpu.memory_space<vmem>>, vector<1x8xf32>,
    %cst_6 = arith.constant 0.000000e+00 : f32
    %10 = vector.broadcast %cst_6 : f32 to vector<8xf32>
    %11 = arith.cmpf ogt, %7, %10 : vector<8xf32>
    %12 = arith.extui %11 : vector<8xi1> to vector<8xi32>
    %13 = vector.shape_cast %12 : vector<8xi32> to vector<1x8xi32>
    %c0_7 = arith.constant 0 : index
    %c0_8 = arith.constant 0 : index
    %14 = vector.load %arg5[%c0_7, %c0_8] : memref<1x8xi32, #tpu.memory_space<vmem>>, vector<1x8xi32>
    tpu.vector_store %arg5[%c0_7, %c0_8], %13 {strides = array<i32>} : memref<1x8xi32, #tpu.memory_space<vmem>>, vector<1x8xi32>,
    return
  }
  func.func @transform_0(%arg0: i32) -> (i32, i32) {
    %c0_i32 = arith.constant 0 : i32
    %c0_i32_0 = arith.constant 0 : i32
    return %arg0, %c0_i32 : i32, i32
  }
  func.func @transform_1(%arg0: i32) -> (i32, i32) {
    %c0_i32 = arith.constant 0 : i32
    %c0_i32_0 = arith.constant 0 : i32
    %c0_i32_1 = arith.constant 0 : i32
    return %c0_i32, %c0_i32_0 : i32, i32
  }
  func.func @transform_2(%arg0: i32) -> i32 {
    %c0_i32 = arith.constant 0 : i32
    %c0_i32_0 = arith.constant 0 : i32
    return %c0_i32 : i32
  }
  func.func @transform_3(%arg0: i32) -> (i32, i32) {
    %c0_i32 = arith.constant 0 : i32
    %c0_i32_0 = arith.constant 0 : i32
    return %c0_i32, %arg0 : i32, i32
  }
  func.func @transform_4(%arg0: i32) -> (i32, i32) {
    %c0_i32 = arith.constant 0 : i32
    %c0_i32_0 = arith.constant 0 : i32
    return %c0_i32, %arg0 : i32, i32
  }
}

</mosaic_0001>

<bundles_post_ra>
// kernel: svm_predict.1
= control target key start
LH: loop header
LB: loop body
LE: loop exit
PB: predicated region body
PF: predicated region fallthrough
CT: control target
= control target key end

     0   :  { %11 = vsyncpa [#allocation4], 0  ;;  %s251_s0 = inlined_call_operand.hbm [shape: f32[8,16], index: 0, kind: input, shape index: {}]   ;;  %s252_s1 = inlined_call_operand.vmem [shape: f32[1,16], index: 1, kind: input, shape index: {}]   ;;  %s253_s2 = inlined_call_operand.<no memory space> [shape: f32[1], index: 2, kind: input, shape index: {}]   ;;  %s254_s3 = inlined_call_operand.hbm [shape: f32[1,8], index: 3, kind: output, shape index: {0}]   ;;  %s255_s4 = inlined_call_operand.hbm [shape: s32[1,8], index: 4, kind: output, shape index: {1}]  }
   0x1   :  { %12 = vsyncpa [#allocation5], 0 }
   0x2   :  { %13 = vsyncpa [#allocation8], 0  ;;  %s170_s15 = smov [#allocation3]   ;;  %s98_s19 = scalar_lea.hbm %s251_s0, 128 }
   0x3   :  { %s20_s16 = sshll.u32 %s170_s15, 4  ;;  %p99_p0 = scmp.ne.s32.totalorder %s251_s0, %s98_s19  ;;  %s21_s16 = int_to_ptr.vmem [resolvable:$true] %s20_s16 }
   0x4   :  { %p102_p1 = scmp.lt.u32.totalorder %s98_s19, %s251_s0 }
   0x6   :  { %p104_p2 = pnand %p102_p1, %p99_p0 }
   0x8   :  { %107 = shalt.err (!%p104_p2)
}
   0x9   :  { %s108_s24 = scalar_lea.vmem %s21_s16, 128  ;;  %p113_p4 = scmp.lt.s32.totalorder %s21_s16, %s21_s16 }
   0xa   :  { %p109_p3 = scmp.ne.s32.totalorder %s21_s16, %s108_s24  ;;  %p114_p5 = scmp.lt.s32.totalorder %s108_s24, %s108_s24 }
   0xc   :  { %p115_p6 = por %p114_p5, %p113_p4 }
   0xe   :  { %p116_p7 = pnand %p115_p6, %p109_p3 }
  0x10   :  { %119 = shalt.err (!%p116_p7)
}
  0x11   :  { %23 = dma.hbm_to_vmem [thread:$0]  %s251_s0, 128, %s21_s16, [#allocation4]  }
  0x12   :  { %164 = dma.done.wait [#allocation4], 128  }
  0x13   :  { %165 = vsyncadd [#allocation4], 4294967168  ;;  %v31_v0 = vld [vmem:[#allocation3] sm:$0xff]  ;;  %vm40_vm0 = vcmask 130048   ;;  %v48_v4 = vlaneseq  ;;  %v45_v7 = vstv %s253_s2  ;;  %s171_s0 = smov [#allocation6]   ;;  %vm55_vm1 = vcmask 57344  }
  0x14   :  { %v93_v1 = vld [vmem:[%s252_s1] ss:$0 sm:$0xff]  ;;  %s70_s5 = sshll.u32 %s171_s0, 4  ;;  %s172_s6 = smov [#allocation7]   ;;  %v173_v12 = vmov 0   ;;  %s71_s5 = int_to_ptr.vmem [resolvable:$true] %s70_s5 }
  0x15   :  { %v39_v2 = vmul.f32 %v93_v1, %v31_v0  ;;  %v49_v5 = vand.u32 127, %v48_v4  ;;  %v51_v6 = vshrl.u32 %v48_v4, 7  ;;  %s80_s7 = sshll.u32 %s172_s6, 4  ;;  %s120_s1 = scalar_lea.vmem %s71_s5, 16  ;;  %s218_s7 = int_to_ptr.vmem [resolvable:$true] %s80_s7 }
  0x16   :  { %p121_p8 = scmp.ne.s32.totalorder %s71_s5, %s120_s1  ;;  %s124_s2 = scalar_lea.vmem %s71_s5, 32 }
  0x17   :  { %v41_v3 = vsel %vm40_vm0, %v39_v2, 0.0  ;;  %v52_v8 = vsub.s32 %v49_v5, %v51_v6  ;;  %p125_p9 = scmp.lt.s32.totalorder %s71_s5, %s71_s5  ;;  %p126_p10 = scmp.lt.s32.totalorder %s124_s2, %s120_s1 }
  0x18   :  { %42 = vadd.xlane.f32.xlu0 %v41_v3 }
  0x19   :  { %p127_p11 = por %p126_p10, %p125_p9 }
  0x1b   :  { %p128_p12 = pnand %p127_p11, %p121_p8 }
  0xa5   :  { %v43_v9 = vpop.xlane.xlu0 %42 }
  0xa6   :  { %v46_v10 = vadd.f32 %v45_v7, %v43_v9 }
  0xa8   :  { %v53_v11 = vrot.slane %v46_v10, %v52_v8  ;;  %vm57_vm2 = vcmp.gt.f32.partialorder %v46_v10, 0.0 }
  0xa9   :  { %v58_v13 = vsel %vm57_vm2, 1, %v173_v12 }
  0xaa   :  { %v62_v14 = vrot.slane %v58_v13, %v52_v8  ;;  %56 = vst.msk [vmem:[#allocation6] sm:$0x1] %vm55_vm1, %v53_v11 }
  0xab   :  { %131 = shalt.err (!%p128_p12)
}
  0xac   :  { %s132_s10 = scalar_lea.hbm %s254_s3, 16 }
  0xad   :  { %p133_p13 = scmp.ne.s32.totalorder %s254_s3, %s132_s10  ;;  %p136_p0 = scmp.lt.u32.totalorder %s132_s10, %s254_s3 }
  0xaf   :  { %p138_p1 = pnand %p136_p0, %p133_p13 }
  0xb1   :  { %141 = shalt.err (!%p138_p1)
}
  0xb2   :  { %73 = dma.vmem_to_hbm [thread:$0]  %s71_s5, 16, %s254_s3, [#allocation5]   ;;  %63 = vst.msk [vmem:[#allocation7] sm:$0x1] %vm55_vm1, %v62_v14 }
  0xb3   :  { %s142_s17 = scalar_lea.vmem %s218_s7, 16  ;;  %s146_s18 = scalar_lea.vmem %s218_s7, 32 }
  0xb4   :  { %p143_p2 = scmp.ne.s32.totalorder %s218_s7, %s142_s17  ;;  %p147_p3 = scmp.lt.s32.totalorder %s218_s7, %s218_s7 }
  0xb5   :  { %p148_p4 = scmp.lt.s32.totalorder %s146_s18, %s142_s17 }
  0xb7   :  { %p149_p5 = por %p148_p4, %p147_p3 }
  0xb9   :  { %p150_p6 = pnand %p149_p5, %p143_p2 }
  0xbb   :  { %153 = shalt.err (!%p150_p6)
}
  0xbc   :  { %s154_s21 = scalar_lea.hbm %s255_s4, 16 }
  0xbd   :  { %p155_p7 = scmp.ne.s32.totalorder %s255_s4, %s154_s21  ;;  %p158_p8 = scmp.lt.u32.totalorder %s154_s21, %s255_s4 }
  0xbf   :  { %p160_p9 = pnand %p158_p8, %p155_p7 }
  0xc1   :  { %163 = shalt.err (!%p160_p9)
}
  0xc2   :  { %83 = dma.vmem_to_hbm [thread:$0]  %s218_s7, 16, %s255_s4, [#allocation8]  }
  0xc3   :  { %166 = dma.done.wait [#allocation5], 16  }
  0xc4   :  { %167 = vsyncadd [#allocation5], 4294967280 }
  0xc5   :  { %168 = dma.done.wait [#allocation8], 16  }
  0xc6   :  { %169 = vsyncadd [#allocation8], 4294967280 }
  0xc7   :  { %90 = vsyncpa [#allocation4], 1 }
  0xc8   :  { %91 = vsyncpa [#allocation5], 1 }
  0xc9   :  { %92 = vsyncpa [#allocation8], 1 }

</bundles_post_ra>
